<compile_context>
chip_gen: v6e
topology: v6e:2x2x1
jax: 0.10.0
libtpu: 0.0.40
codegen_flags: <defaults>
</compile_context>

<pallas_src>
import functools
import math

import jax
import jax.numpy as jnp
from jax.experimental import pallas as pl
from jax.experimental.pallas import tpu as pltpu

_EPS = 1e-5  # nn.LayerNorm default


# ----------------------------- helpers ---------------------------------------

def _full_spec(shape):
    # Whole-array block, constant block index -> stays resident across the grid.
    return pl.BlockSpec(shape, lambda *args: (0,) * len(shape))


def _row_tile(n, cap=512):
    # Row-tile size: full extent when small, else a lane/sublane-friendly cap.
    return n if n <= cap else cap


# ----------------------------- kernels ----------------------------------------

def _pe_kernel(x_ref, pe_ref, o_ref, *, scale):
    # x/o block: (1, S, E) for batch b; pe: full (B, E) table, indexed by batch
    # (reproduces the reference's P[:, :X.shape[1], :] quirk).
    b = pl.program_id(0)
    o_ref[0] = scale * x_ref[0] + pe_ref[pl.ds(b, 1), :]


def _mha_kernel(x_ref, g_ref, beta_ref, wqkv_ref, bqkv_ref, wout_ref, bout_ref,
                o_ref, *, num_heads, head_dim, head_scale, len_scale):
    # Fused: pre-LN -> QKV projection -> per-head attention -> out-proj -> +residual
    x = x_ref[0]                                                    # (S, E)
    mean = jnp.mean(x, axis=-1, keepdims=True)
    var = jnp.mean((x - mean) ** 2, axis=-1, keepdims=True)
    xn = (x - mean) * jax.lax.rsqrt(var + _EPS) * g_ref[...] + beta_ref[...]

    qkv = jnp.dot(xn, wqkv_ref[...], preferred_element_type=jnp.float32) + bqkv_ref[...]
    E = x.shape[-1]

    acc = x + bout_ref[...]                    # residual + out-proj bias
    for h in range(num_heads):                 # static unroll over heads
        lo = h * head_dim
        q = qkv[:, lo:lo + head_dim] * head_scale          # q * head_dim**-0.5
        k = qkv[:, E + lo:E + lo + head_dim]
        v = qkv[:, 2 * E + lo:2 * E + lo + head_dim]
        s = jnp.dot(q, k.T, preferred_element_type=jnp.float32) * len_scale
        s = s - jnp.max(s, axis=-1, keepdims=True)
        p = jnp.exp(s)
        p = p * pl.reciprocal(jnp.sum(p, axis=-1, keepdims=True), approx=True)
        a = jnp.dot(p, v, preferred_element_type=jnp.float32)        # (S, Dh)
        # fold out-projection per head: attn_cat @ W_out == sum_h a_h @ W_out[rows_h]
        acc = acc + jnp.dot(a, wout_ref[lo:lo + head_dim, :],
                            preferred_element_type=jnp.float32)
    o_ref[0] = acc


def _ffn_kernel(x_ref, g_ref, beta_ref, w1_ref, b1_ref, w2_ref, b2_ref, o_ref):
    # Fused: pre-LN -> fc1 -> relu -> fc2 -> +residual  (row-tiled)
    x = x_ref[...]
    mean = jnp.mean(x, axis=-1, keepdims=True)
    var = jnp.mean((x - mean) ** 2, axis=-1, keepdims=True)
    xn = (x - mean) * jax.lax.rsqrt(var + _EPS) * g_ref[...] + beta_ref[...]
    h = jnp.dot(xn, w1_ref[...], preferred_element_type=jnp.float32) + b1_ref[...]
    h = jnp.maximum(h, 0.0)
    o_ref[...] = x + jnp.dot(h, w2_ref[...], preferred_element_type=jnp.float32) + b2_ref[...]


def _ln_kernel(x_ref, g_ref, beta_ref, o_ref):
    x = x_ref[...]
    mean = jnp.mean(x, axis=-1, keepdims=True)
    var = jnp.mean((x - mean) ** 2, axis=-1, keepdims=True)
    o_ref[...] = (x - mean) * jax.lax.rsqrt(var + _EPS) * g_ref[...] + beta_ref[...]


# --------------------------- pallas_call wrappers ------------------------------

def pe_scale_add(x_bse, pe_tab, scale):
    B, S, E = x_bse.shape
    blk = pl.BlockSpec((1, S, E), lambda b: (b, 0, 0))
    return pl.pallas_call(
        functools.partial(_pe_kernel, scale=scale),
        out_shape=jax.ShapeDtypeStruct((B, S, E), jnp.float32),
        grid=(B,),
        in_specs=[blk, _full_spec((B, E))],
        out_specs=blk,
        compiler_params=pltpu.CompilerParams(dimension_semantics=("parallel",)),
    )(x_bse, pe_tab)


def mha_block(x_bse, p, num_heads):
    B, S, E = x_bse.shape
    Dh = E // num_heads
    blk = pl.BlockSpec((1, S, E), lambda b: (b, 0, 0))
    return pl.pallas_call(
        functools.partial(_mha_kernel, num_heads=num_heads, head_dim=Dh,
                          head_scale=Dh ** -0.5, len_scale=1.0 / math.sqrt(S)),
        out_shape=jax.ShapeDtypeStruct((B, S, E), jnp.float32),
        grid=(B,),
        in_specs=[blk,
                  _full_spec((1, E)), _full_spec((1, E)),
                  _full_spec((E, 3 * E)), _full_spec((1, 3 * E)),
                  _full_spec((E, E)), _full_spec((1, E))],
        out_specs=blk,
        input_output_aliases={0: 0},          # residual updated in place
        compiler_params=pltpu.CompilerParams(dimension_semantics=("parallel",)),
    )(x_bse,
      p["ln0_g"].reshape(1, E), p["ln0_b"].reshape(1, E),
      p["w_qkv"], p["b_qkv"].reshape(1, 3 * E),
      p["w_out"], p["b_out"].reshape(1, E))


def ffn_block(x2, p):
    N, E = x2.shape
    tr = _row_tile(N)
    row = pl.BlockSpec((tr, E), lambda i: (i, 0))
    return pl.pallas_call(
        _ffn_kernel,
        out_shape=jax.ShapeDtypeStruct((N, E), jnp.float32),
        grid=(pl.cdiv(N, tr),),
        in_specs=[row,
                  _full_spec((1, E)), _full_spec((1, E)),
                  _full_spec((E, E)), _full_spec((1, E)),
                  _full_spec((E, E)), _full_spec((1, E))],
        out_specs=row,
        input_output_aliases={0: 0},          # residual updated in place
        compiler_params=pltpu.CompilerParams(dimension_semantics=("parallel",)),
    )(x2,
      p["ln1_g"].reshape(1, E), p["ln1_b"].reshape(1, E),
      p["w_fc1"], p["b_fc1"].reshape(1, E),
      p["w_fc2"], p["b_fc2"].reshape(1, E))


def layernorm_rows(x2, g, b):
    N, E = x2.shape
    tr = _row_tile(N, cap=1024)
    row = pl.BlockSpec((tr, E), lambda i: (i, 0))
    return pl.pallas_call(
        _ln_kernel,
        out_shape=jax.ShapeDtypeStruct((N, E), jnp.float32),
        grid=(pl.cdiv(N, tr),),
        in_specs=[row, _full_spec((1, E)), _full_spec((1, E))],
        out_specs=row,
        compiler_params=pltpu.CompilerParams(dimension_semantics=("parallel",)),
    )(x2, g.reshape(1, E), b.reshape(1, E))


# ------------------------------ model glue -------------------------------------

def positional_table(n, E):
    # P[pos, 0::2] = sin(pos / 10000**(2i/E)); P[pos, 1::2] = cos(...)
    pos = jnp.arange(n, dtype=jnp.float32)[:, None]
    div = jnp.power(10000.0, jnp.arange(0, E, 2, dtype=jnp.float32) / E)
    ang = pos / div
    pe = jnp.zeros((n, E), jnp.float32)
    pe = pe.at[:, 0::2].set(jnp.sin(ang))
    pe = pe.at[:, 1::2].set(jnp.cos(ang))
    return pe


def transformer_encoder(x_in, params, *, num_heads):
    S, B, E = x_in.shape
    embed_scale = math.sqrt(E)
    # Reproduce original quirk: positional table indexed by the batch axis.
    pe = positional_table(B, E)                        # (B, E)
    x = jnp.transpose(x_in, (1, 0, 2))                 # one-time switch to (B, S, E)
    x = pe_scale_add(x, pe, embed_scale)
    # TODO(synk): embed/attn/relu/res dropouts are eval-mode identities here.
    for lp in params["layers"]:
        x = mha_block(x, lp, num_heads)
        x = ffn_block(x.reshape(B * S, E), lp).reshape(B, S, E)
    x = layernorm_rows(x.reshape(B * S, E), params["ln_g"], params["ln_b"])
    return jnp.transpose(x.reshape(B, S, E), (1, 0, 2))   # back to (S, B, E)


def init_params(key, E, layers):
    # Weights stored already transposed to (in, out) so kernels compute x @ W.
    params = {"layers": []}
    lkeys = jax.random.split(key, layers)
    s = 1.0 / math.sqrt(E)
    for lk in lkeys:
        ks = jax.random.split(lk, 8)
        params["layers"].append(dict(
            w_qkv=jax.random.normal(ks[0], (E, 3 * E), jnp.float32) * s,
            b_qkv=jax.random.normal(ks[1], (3 * E,), jnp.float32) * 0.01,
            w_out=jax.random.normal(ks[2], (E, E), jnp.float32) * s,
            b_out=jax.random.normal(ks[3], (E,), jnp.float32) * 0.01,
            w_fc1=jax.random.normal(ks[4], (E, E), jnp.float32) * s,     # fc1: Linear(E, E) per reference
            b_fc1=jax.random.normal(ks[5], (E,), jnp.float32) * 0.01,
            w_fc2=jax.random.normal(ks[6], (E, E), jnp.float32) * s,
            b_fc2=jax.random.normal(ks[7], (E,), jnp.float32) * 0.01,
            ln0_g=jnp.ones((E,), jnp.float32),
            ln0_b=jnp.zeros((E,), jnp.float32),
            ln1_g=jnp.ones((E,), jnp.float32),
            ln1_b=jnp.zeros((E,), jnp.float32),
        ))
    params["ln_g"] = jnp.ones((E,), jnp.float32)
    params["ln_b"] = jnp.zeros((E,), jnp.float32)
    return params


if __name__ == "__main__":
    S, B, E, H, L = 8, 2, 32, 4, 2   # seq, batch, embed_dim, heads, layers
    key = jax.random.PRNGKey(0)
    kx, kp = jax.random.split(key)
    x_in = jax.random.normal(kx, (S, B, E), jnp.float32)
    params = init_params(kp, E, L)

    fwd = jax.jit(functools.partial(transformer_encoder, num_heads=H))
    out = jax.block_until_ready(fwd(x_in, params))
    assert out.shape == (S, B, E)
    assert bool(jnp.all(jnp.isfinite(out)))
    print("KERNEL_OK")
</pallas_src>

<mosaic_0001>
module attributes {stable_mosaic.version = 11 : i64} {
  func.func @_mha_kernel(%arg0: i32, %arg1: memref<1x8x32xf32, #tpu.memory_space<vmem>>, %arg2: memref<1x32xf32, #tpu.memory_space<vmem>>, %arg3: memref<1x32xf32, #tpu.memory_space<vmem>>, %arg4: memref<32x96xf32, #tpu.memory_space<vmem>>, %arg5: memref<1x96xf32, #tpu.memory_space<vmem>>, %arg6: memref<32x32xf32, #tpu.memory_space<vmem>>, %arg7: memref<1x32xf32, #tpu.memory_space<vmem>>, %arg8: memref<1x8x32xf32, #tpu.memory_space<vmem>>) attributes {dimension_semantics = [#tpu.dimension_semantics<parallel>], iteration_bounds = array<i64: 2>, scalar_prefetch = 0 : i64, scratch_operands = 0 : i64, tpu.core_type = #tpu.core_type<tc>, window_params = [{transform_indices = @transform_0, window_bounds = array<i64: 1, 8, 32>}, {pipeline_mode = #tpu.pipeline_mode<synchronous>, transform_indices = @transform_1, window_bounds = array<i64: 1, 32>}, {pipeline_mode = #tpu.pipeline_mode<synchronous>, transform_indices = @transform_2, window_bounds = array<i64: 1, 32>}, {pipeline_mode = #tpu.pipeline_mode<synchronous>, transform_indices = @transform_3, window_bounds = array<i64: 32, 96>}, {pipeline_mode = #tpu.pipeline_mode<synchronous>, transform_indices = @transform_4, window_bounds = array<i64: 1, 96>}, {pipeline_mode = #tpu.pipeline_mode<synchronous>, transform_indices = @transform_5, window_bounds = array<i64: 32, 32>}, {pipeline_mode = #tpu.pipeline_mode<synchronous>, transform_indices = @transform_6, window_bounds = array<i64: 1, 32>}, {transform_indices = @transform_7, window_bounds = array<i64: 1, 8, 32>}]} {
    %c0 = arith.constant 0 : index
    %c0_0 = arith.constant 0 : index
    %c0_1 = arith.constant 0 : index
    %0 = vector.load %arg1[%c0, %c0_0, %c0_1] : memref<1x8x32xf32, #tpu.memory_space<vmem>>, vector<1x8x32xf32>
    %1 = vector.shape_cast %0 : vector<1x8x32xf32> to vector<8x32xf32>
    %cst = arith.constant dense<0.000000e+00> : vector<8xf32>
    %2 = vector.multi_reduction <add>, %1, %cst [1] : vector<8x32xf32> to vector<8xf32>
    %3 = vector.shape_cast %2 : vector<8xf32> to vector<8x1xf32>
    %cst_2 = arith.constant 3.200000e+01 : f32
    %4 = vector.broadcast %cst_2 : f32 to vector<8x1xf32>
    %5 = arith.divf %3, %4 : vector<8x1xf32>
    %6 = vector.broadcast %5 : vector<8x1xf32> to vector<8x32xf32>
    %7 = arith.subf %1, %6 : vector<8x32xf32>
    %8 = arith.mulf %7, %7 : vector<8x32xf32>
    %cst_3 = arith.constant dense<0.000000e+00> : vector<8xf32>
    %9 = vector.multi_reduction <add>, %8, %cst_3 [1] : vector<8x32xf32> to vector<8xf32>
    %10 = vector.shape_cast %9 : vector<8xf32> to vector<8x1xf32>
    %cst_4 = arith.constant 3.200000e+01 : f32
    %11 = vector.broadcast %cst_4 : f32 to vector<8x1xf32>
    %12 = arith.divf %10, %11 : vector<8x1xf32>
    %13 = vector.broadcast %5 : vector<8x1xf32> to vector<8x32xf32>
    %14 = arith.subf %1, %13 : vector<8x32xf32>
    %cst_5 = arith.constant 9.99999974E-6 : f32
    %15 = vector.broadcast %cst_5 : f32 to vector<8x1xf32>
    %16 = arith.addf %12, %15 : vector<8x1xf32>
    %17 = math.rsqrt %16 : vector<8x1xf32>
    %18 = vector.broadcast %17 : vector<8x1xf32> to vector<8x32xf32>
    %19 = arith.mulf %14, %18 : vector<8x32xf32>
    %c0_6 = arith.constant 0 : index
    %c0_7 = arith.constant 0 : index
    %20 = vector.load %arg2[%c0_6, %c0_7] : memref<1x32xf32, #tpu.memory_space<vmem>>, vector<1x32xf32>
    %21 = vector.broadcast %20 : vector<1x32xf32> to vector<8x32xf32>
    %22 = arith.mulf %19, %21 : vector<8x32xf32>
    %c0_8 = arith.constant 0 : index
    %c0_9 = arith.constant 0 : index
    %23 = vector.load %arg3[%c0_8, %c0_9] : memref<1x32xf32, #tpu.memory_space<vmem>>, vector<1x32xf32>
    %24 = vector.broadcast %23 : vector<1x32xf32> to vector<8x32xf32>
    %25 = arith.addf %22, %24 : vector<8x32xf32>
    %c0_10 = arith.constant 0 : index
    %c0_11 = arith.constant 0 : index
    %26 = vector.load %arg4[%c0_10, %c0_11] : memref<32x96xf32, #tpu.memory_space<vmem>>, vector<32x96xf32>
    %cst_12 = arith.constant dense<0.000000e+00> : vector<8x96xf32>
    %27 = tpu.matmul %25, %26, %cst_12 {dimension_numbers = #tpu.dot_dimension_numbers<[1], [0], [0], [1], [0, 0, 1, 1], [], []>} : vector<8x32xf32>, vector<32x96xf32>, vector<8x96xf32> -> vector<8x96xf32>
    %c0_13 = arith.constant 0 : index
    %c0_14 = arith.constant 0 : index
    %28 = vector.load %arg5[%c0_13, %c0_14] : memref<1x96xf32, #tpu.memory_space<vmem>>, vector<1x96xf32>
    %29 = vector.broadcast %28 : vector<1x96xf32> to vector<8x96xf32>
    %30 = arith.addf %27, %29 : vector<8x96xf32>
    %c0_15 = arith.constant 0 : index
    %c0_16 = arith.constant 0 : index
    %31 = vector.load %arg7[%c0_15, %c0_16] : memref<1x32xf32, #tpu.memory_space<vmem>>, vector<1x32xf32>
    %32 = vector.broadcast %31 : vector<1x32xf32> to vector<8x32xf32>
    %33 = arith.addf %1, %32 : vector<8x32xf32>
    %34 = vector.extract_strided_slice %30 {offsets = [0, 0], sizes = [8, 8], strides = [1, 1]} : vector<8x96xf32> to vector<8x8xf32>
    %cst_17 = arith.constant 0.353553385 : f32
    %35 = vector.broadcast %cst_17 : f32 to vector<8x8xf32>
    %36 = arith.mulf %34, %35 : vector<8x8xf32>
    %37 = vector.extract_strided_slice %30 {offsets = [0, 32], sizes = [8, 8], strides = [1, 1]} : vector<8x96xf32> to vector<8x8xf32>
    %38 = vector.extract_strided_slice %30 {offsets = [0, 64], sizes = [8, 8], strides = [1, 1]} : vector<8x96xf32> to vector<8x8xf32>
    %39 = tpu.transpose %37, [1, 0] : vector<8x8xf32> -> vector<8x8xf32>
    %cst_18 = arith.constant dense<0.000000e+00> : vector<8x8xf32>
    %40 = tpu.matmul %36, %39, %cst_18 {dimension_numbers = #tpu.dot_dimension_numbers<[1], [0], [0], [1], [0, 0, 1, 1], [], []>} : vector<8x8xf32>, vector<8x8xf32>, vector<8x8xf32> -> vector<8x8xf32>
    %cst_19 = arith.constant 0.353553385 : f32
    %41 = vector.broadcast %cst_19 : f32 to vector<8x8xf32>
    %42 = arith.mulf %40, %41 : vector<8x8xf32>
    %cst_20 = arith.constant dense<0xFF800000> : vector<8xf32>
    %43 = vector.multi_reduction <maximumf>, %42, %cst_20 [1] : vector<8x8xf32> to vector<8xf32>
    %44 = vector.shape_cast %43 : vector<8xf32> to vector<8x1xf32>
    %45 = vector.broadcast %44 : vector<8x1xf32> to vector<8x8xf32>
    %46 = arith.subf %42, %45 : vector<8x8xf32>
    %47 = math.exp %46 : vector<8x8xf32>
    %cst_21 = arith.constant dense<0.000000e+00> : vector<8xf32>
    %48 = vector.multi_reduction <add>, %47, %cst_21 [1] : vector<8x8xf32> to vector<8xf32>
    %49 = vector.shape_cast %48 : vector<8xf32> to vector<8x1xf32>
    %50 = tpu.reciprocal %49 {approx = true} : vector<8x1xf32> -> vector<8x1xf32>
    %51 = vector.broadcast %50 : vector<8x1xf32> to vector<8x8xf32>
    %52 = arith.mulf %47, %51 : vector<8x8xf32>
    %cst_22 = arith.constant dense<0.000000e+00> : vector<8x8xf32>
    %53 = tpu.matmul %52, %38, %cst_22 {dimension_numbers = #tpu.dot_dimension_numbers<[1], [0], [0], [1], [0, 0, 1, 1], [], []>} : vector<8x8xf32>, vector<8x8xf32>, vector<8x8xf32> -> vector<8x8xf32>
    %c0_23 = arith.constant 0 : index
    %c0_24 = arith.constant 0 : index
    %54 = vector.load %arg6[%c0_23, %c0_24] : memref<32x32xf32, #tpu.memory_space<vmem>>, vector<8x32xf32>
    %cst_25 = arith.constant dense<0.000000e+00> : vector<8x32xf32>
    %55 = tpu.matmul %53, %54, %cst_25 {dimension_numbers = #tpu.dot_dimension_numbers<[1], [0], [0], [1], [0, 0, 1, 1], [], []>} : vector<8x8xf32>, vector<8x32xf32>, vector<8x32xf32> -> vector<8x32xf32>
    %56 = arith.addf %33, %55 : vector<8x32xf32>
    %57 = vector.extract_strided_slice %30 {offsets = [0, 8], sizes = [8, 8], strides = [1, 1]} : vector<8x96xf32> to vector<8x8xf32>
    %cst_26 = arith.constant 0.353553385 : f32
    %58 = vector.broadcast %cst_26 : f32 to vector<8x8xf32>
    %59 = arith.mulf %57, %58 : vector<8x8xf32>
    %60 = vector.extract_strided_slice %30 {offsets = [0, 40], sizes = [8, 8], strides = [1, 1]} : vector<8x96xf32> to vector<8x8xf32>
    %61 = vector.extract_strided_slice %30 {offsets = [0, 72], sizes = [8, 8], strides = [1, 1]} : vector<8x96xf32> to vector<8x8xf32>
    %62 = tpu.transpose %60, [1, 0] : vector<8x8xf32> -> vector<8x8xf32>
    %cst_27 = arith.constant dense<0.000000e+00> : vector<8x8xf32>
    %63 = tpu.matmul %59, %62, %cst_27 {dimension_numbers = #tpu.dot_dimension_numbers<[1], [0], [0], [1], [0, 0, 1, 1], [], []>} : vector<8x8xf32>, vector<8x8xf32>, vector<8x8xf32> -> vector<8x8xf32>
    %cst_28 = arith.constant 0.353553385 : f32
    %64 = vector.broadcast %cst_28 : f32 to vector<8x8xf32>
    %65 = arith.mulf %63, %64 : vector<8x8xf32>
    %cst_29 = arith.constant dense<0xFF800000> : vector<8xf32>
    %66 = vector.multi_reduction <maximumf>, %65, %cst_29 [1] : vector<8x8xf32> to vector<8xf32>
    %67 = vector.shape_cast %66 : vector<8xf32> to vector<8x1xf32>
    %68 = vector.broadcast %67 : vector<8x1xf32> to vector<8x8xf32>
    %69 = arith.subf %65, %68 : vector<8x8xf32>
    %70 = math.exp %69 : vector<8x8xf32>
    %cst_30 = arith.constant dense<0.000000e+00> : vector<8xf32>
    %71 = vector.multi_reduction <add>, %70, %cst_30 [1] : vector<8x8xf32> to vector<8xf32>
    %72 = vector.shape_cast %71 : vector<8xf32> to vector<8x1xf32>
    %73 = tpu.reciprocal %72 {approx = true} : vector<8x1xf32> -> vector<8x1xf32>
    %74 = vector.broadcast %73 : vector<8x1xf32> to vector<8x8xf32>
    %75 = arith.mulf %70, %74 : vector<8x8xf32>
    %cst_31 = arith.constant dense<0.000000e+00> : vector<8x8xf32>
    %76 = tpu.matmul %75, %61, %cst_31 {dimension_numbers = #tpu.dot_dimension_numbers<[1], [0], [0], [1], [0, 0, 1, 1], [], []>} : vector<8x8xf32>, vector<8x8xf32>, vector<8x8xf32> -> vector<8x8xf32>
    %c8 = arith.constant 8 : index
    %c0_32 = arith.constant 0 : index
    %77 = vector.load %arg6[%c8, %c0_32] : memref<32x32xf32, #tpu.memory_space<vmem>>, vector<8x32xf32>
    %cst_33 = arith.constant dense<0.000000e+00> : vector<8x32xf32>
    %78 = tpu.matmul %76, %77, %cst_33 {dimension_numbers = #tpu.dot_dimension_numbers<[1], [0], [0], [1], [0, 0, 1, 1], [], []>} : vector<8x8xf32>, vector<8x32xf32>, vector<8x32xf32> -> vector<8x32xf32>
    %79 = arith.addf %56, %78 : vector<8x32xf32>
    %80 = vector.extract_strided_slice %30 {offsets = [0, 16], sizes = [8, 8], strides = [1, 1]} : vector<8x96xf32> to vector<8x8xf32>
    %cst_34 = arith.constant 0.353553385 : f32
    %81 = vector.broadcast %cst_34 : f32 to vector<8x8xf32>
    %82 = arith.mulf %80, %81 : vector<8x8xf32>
    %83 = vector.extract_strided_slice %30 {offsets = [0, 48], sizes = [8, 8], strides = [1, 1]} : vector<8x96xf32> to vector<8x8xf32>
    %84 = vector.extract_strided_slice %30 {offsets = [0, 80], sizes = [8, 8], strides = [1, 1]} : vector<8x96xf32> to vector<8x8xf32>
    %85 = tpu.transpose %83, [1, 0] : vector<8x8xf32> -> vector<8x8xf32>
    %cst_35 = arith.constant dense<0.000000e+00> : vector<8x8xf32>
    %86 = tpu.matmul %82, %85, %cst_35 {dimension_numbers = #tpu.dot_dimension_numbers<[1], [0], [0], [1], [0, 0, 1, 1], [], []>} : vector<8x8xf32>, vector<8x8xf32>, vector<8x8xf32> -> vector<8x8xf32>
    %cst_36 = arith.constant 0.353553385 : f32
    %87 = vector.broadcast %cst_36 : f32 to vector<8x8xf32>
    %88 = arith.mulf %86, %87 : vector<8x8xf32>
    %cst_37 = arith.constant dense<0xFF800000> : vector<8xf32>
    %89 = vector.multi_reduction <maximumf>, %88, %cst_37 [1] : vector<8x8xf32> to vector<8xf32>
    %90 = vector.shape_cast %89 : vector<8xf32> to vector<8x1xf32>
    %91 = vector.broadcast %90 : vector<8x1xf32> to vector<8x8xf32>
    %92 = arith.subf %88, %91 : vector<8x8xf32>
    %93 = math.exp %92 : vector<8x8xf32>
    %cst_38 = arith.constant dense<0.000000e+00> : vector<8xf32>
    %94 = vector.multi_reduction <add>, %93, %cst_38 [1] : vector<8x8xf32> to vector<8xf32>
    %95 = vector.shape_cast %94 : vector<8xf32> to vector<8x1xf32>
    %96 = tpu.reciprocal %95 {approx = true} : vector<8x1xf32> -> vector<8x1xf32>
    %97 = vector.broadcast %96 : vector<8x1xf32> to vector<8x8xf32>
    %98 = arith.mulf %93, %97 : vector<8x8xf32>
    %cst_39 = arith.constant dense<0.000000e+00> : vector<8x8xf32>
    %99 = tpu.matmul %98, %84, %cst_39 {dimension_numbers = #tpu.dot_dimension_numbers<[1], [0], [0], [1], [0, 0, 1, 1], [], []>} : vector<8x8xf32>, vector<8x8xf32>, vector<8x8xf32> -> vector<8x8xf32>
    %c16 = arith.constant 16 : index
    %c0_40 = arith.constant 0 : index
    %100 = vector.load %arg6[%c16, %c0_40] : memref<32x32xf32, #tpu.memory_space<vmem>>, vector<8x32xf32>
    %cst_41 = arith.constant dense<0.000000e+00> : vector<8x32xf32>
    %101 = tpu.matmul %99, %100, %cst_41 {dimension_numbers = #tpu.dot_dimension_numbers<[1], [0], [0], [1], [0, 0, 1, 1], [], []>} : vector<8x8xf32>, vector<8x32xf32>, vector<8x32xf32> -> vector<8x32xf32>
    %102 = arith.addf %79, %101 : vector<8x32xf32>
    %103 = vector.extract_strided_slice %30 {offsets = [0, 24], sizes = [8, 8], strides = [1, 1]} : vector<8x96xf32> to vector<8x8xf32>
    %cst_42 = arith.constant 0.353553385 : f32
    %104 = vector.broadcast %cst_42 : f32 to vector<8x8xf32>
    %105 = arith.mulf %103, %104 : vector<8x8xf32>
    %106 = vector.extract_strided_slice %30 {offsets = [0, 56], sizes = [8, 8], strides = [1, 1]} : vector<8x96xf32> to vector<8x8xf32>
    %107 = vector.extract_strided_slice %30 {offsets = [0, 88], sizes = [8, 8], strides = [1, 1]} : vector<8x96xf32> to vector<8x8xf32>
    %108 = tpu.transpose %106, [1, 0] : vector<8x8xf32> -> vector<8x8xf32>
    %cst_43 = arith.constant dense<0.000000e+00> : vector<8x8xf32>
    %109 = tpu.matmul %105, %108, %cst_43 {dimension_numbers = #tpu.dot_dimension_numbers<[1], [0], [0], [1], [0, 0, 1, 1], [], []>} : vector<8x8xf32>, vector<8x8xf32>, vector<8x8xf32> -> vector<8x8xf32>
    %cst_44 = arith.constant 0.353553385 : f32
    %110 = vector.broadcast %cst_44 : f32 to vector<8x8xf32>
    %111 = arith.mulf %109, %110 : vector<8x8xf32>
    %cst_45 = arith.constant dense<0xFF800000> : vector<8xf32>
    %112 = vector.multi_reduction <maximumf>, %111, %cst_45 [1] : vector<8x8xf32> to vector<8xf32>
    %113 = vector.shape_cast %112 : vector<8xf32> to vector<8x1xf32>
    %114 = vector.broadcast %113 : vector<8x1xf32> to vector<8x8xf32>
    %115 = arith.subf %111, %114 : vector<8x8xf32>
    %116 = math.exp %115 : vector<8x8xf32>
    %cst_46 = arith.constant dense<0.000000e+00> : vector<8xf32>
    %117 = vector.multi_reduction <add>, %116, %cst_46 [1] : vector<8x8xf32> to vector<8xf32>
    %118 = vector.shape_cast %117 : vector<8xf32> to vector<8x1xf32>
    %119 = tpu.reciprocal %118 {approx = true} : vector<8x1xf32> -> vector<8x1xf32>
    %120 = vector.broadcast %119 : vector<8x1xf32> to vector<8x8xf32>
    %121 = arith.mulf %116, %120 : vector<8x8xf32>
    %cst_47 = arith.constant dense<0.000000e+00> : vector<8x8xf32>
    %122 = tpu.matmul %121, %107, %cst_47 {dimension_numbers = #tpu.dot_dimension_numbers<[1], [0], [0], [1], [0, 0, 1, 1], [], []>} : vector<8x8xf32>, vector<8x8xf32>, vector<8x8xf32> -> vector<8x8xf32>
    %c24 = arith.constant 24 : index
    %c0_48 = arith.constant 0 : index
    %123 = vector.load %arg6[%c24, %c0_48] : memref<32x32xf32, #tpu.memory_space<vmem>>, vector<8x32xf32>
    %cst_49 = arith.constant dense<0.000000e+00> : vector<8x32xf32>
    %124 = tpu.matmul %122, %123, %cst_49 {dimension_numbers = #tpu.dot_dimension_numbers<[1], [0], [0], [1], [0, 0, 1, 1], [], []>} : vector<8x8xf32>, vector<8x32xf32>, vector<8x32xf32> -> vector<8x32xf32>
    %125 = arith.addf %102, %124 : vector<8x32xf32>
    %c0_50 = arith.constant 0 : index
    %c0_51 = arith.constant 0 : index
    %c0_52 = arith.constant 0 : index
    %126 = vector.load %arg8[%c0_50, %c0_51, %c0_52] : memref<1x8x32xf32, #tpu.memory_space<vmem>>, vector<1x8x32xf32>
    %127 = vector.shape_cast %126 : vector<1x8x32xf32> to vector<8x32xf32>
    %128 = vector.shape_cast %125 : vector<8x32xf32> to vector<1x8x32xf32>
    tpu.vector_store %arg8[%c0_50, %c0_51, %c0_52], %128 {strides = array<i32>} : memref<1x8x32xf32, #tpu.memory_space<vmem>>, vector<1x8x32xf32>,
    return
  }
  func.func @transform_0(%arg0: i32) -> (i32, i32, i32) {
    %c0_i32 = arith.constant 0 : i32
    %c0_i32_0 = arith.constant 0 : i32
    %c0_i32_1 = arith.constant 0 : i32
    return %arg0, %c0_i32, %c0_i32_0 : i32, i32, i32
  }
  func.func @transform_1(%arg0: i32) -> (i32, i32) {
    %c0_i32 = arith.constant 0 : i32
    %c0_i32_0 = arith.constant 0 : i32
    %c0_i32_1 = arith.constant 0 : i32
    return %c0_i32, %c0_i32_0 : i32, i32
  }
  func.func @transform_2(%arg0: i32) -> (i32, i32) {
    %c0_i32 = arith.constant 0 : i32
    %c0_i32_0 = arith.constant 0 : i32
    %c0_i32_1 = arith.constant 0 : i32
    return %c0_i32, %c0_i32_0 : i32, i32
  }
  func.func @transform_3(%arg0: i32) -> (i32, i32) {
    %c0_i32 = arith.constant 0 : i32
    %c0_i32_0 = arith.constant 0 : i32
    %c0_i32_1 = arith.constant 0 : i32
    return %c0_i32, %c0_i32_0 : i32, i32
  }
  func.func @transform_4(%arg0: i32) -> (i32, i32) {
    %c0_i32 = arith.constant 0 : i32
    %c0_i32_0 = arith.constant 0 : i32
    %c0_i32_1 = arith.constant 0 : i32
    return %c0_i32, %c0_i32_0 : i32, i32
  }
  func.func @transform_5(%arg0: i32) -> (i32, i32) {
    %c0_i32 = arith.constant 0 : i32
    %c0_i32_0 = arith.constant 0 : i32
    %c0_i32_1 = arith.constant 0 : i32
    return %c0_i32, %c0_i32_0 : i32, i32
  }
  func.func @transform_6(%arg0: i32) -> (i32, i32) {
    %c0_i32 = arith.constant 0 : i32
    %c0_i32_0 = arith.constant 0 : i32
    %c0_i32_1 = arith.constant 0 : i32
    return %c0_i32, %c0_i32_0 : i32, i32
  }
  func.func @transform_7(%arg0: i32) -> (i32, i32, i32) {
    %c0_i32 = arith.constant 0 : i32
    %c0_i32_0 = arith.constant 0 : i32
    %c0_i32_1 = arith.constant 0 : i32
    return %arg0, %c0_i32, %c0_i32_0 : i32, i32, i32
  }
}

module attributes {stable_mosaic.version = 11 : i64} {
  func.func @_pe_kernel(%arg0: i32, %arg1: memref<1x8x32xf32, #tpu.memory_space<vmem>>, %arg2: memref<2x32xf32, #tpu.memory_space<vmem>>, %arg3: memref<1x8x32xf32, #tpu.memory_space<vmem>>) attributes {dimension_semantics = [#tpu.dimension_semantics<parallel>], iteration_bounds = array<i64: 2>, scalar_prefetch = 0 : i64, scratch_operands = 0 : i64, tpu.core_type = #tpu.core_type<tc>, window_params = [{transform_indices = @transform_0, window_bounds = array<i64: 1, 8, 32>}, {pipeline_mode = #tpu.pipeline_mode<synchronous>, transform_indices = @transform_1, window_bounds = array<i64: 2, 32>}, {transform_indices = @transform_2, window_bounds = array<i64: 1, 8, 32>}]} {
    %c0 = arith.constant 0 : index
    %c0_0 = arith.constant 0 : index
    %c0_1 = arith.constant 0 : index
    %0 = vector.load %arg1[%c0, %c0_0, %c0_1] : memref<1x8x32xf32, #tpu.memory_space<vmem>>, vector<1x8x32xf32>
    %1 = vector.shape_cast %0 : vector<1x8x32xf32> to vector<8x32xf32>
    %cst = arith.constant 5.65685415 : f32
    %2 = vector.broadcast %cst : f32 to vector<8x32xf32>
    %3 = arith.mulf %2, %1 : vector<8x32xf32>
    %4 = arith.index_cast %arg0 : i32 to index
    %c0_2 = arith.constant 0 : index
    %5 = vector.load %arg2[%4, %c0_2] : memref<2x32xf32, #tpu.memory_space<vmem>>, vector<1x32xf32>
    %6 = vector.broadcast %5 : vector<1x32xf32> to vector<8x32xf32>
    %7 = arith.addf %3, %6 : vector<8x32xf32>
    %c0_3 = arith.constant 0 : index
    %c0_4 = arith.constant 0 : index
    %c0_5 = arith.constant 0 : index
    %8 = vector.load %arg3[%c0_3, %c0_4, %c0_5] : memref<1x8x32xf32, #tpu.memory_space<vmem>>, vector<1x8x32xf32>
    %9 = vector.shape_cast %8 : vector<1x8x32xf32> to vector<8x32xf32>
    %10 = vector.shape_cast %7 : vector<8x32xf32> to vector<1x8x32xf32>
    tpu.vector_store %arg3[%c0_3, %c0_4, %c0_5], %10 {strides = array<i32>} : memref<1x8x32xf32, #tpu.memory_space<vmem>>, vector<1x8x32xf32>,
    return
  }
  func.func @transform_0(%arg0: i32) -> (i32, i32, i32) {
    %c0_i32 = arith.constant 0 : i32
    %c0_i32_0 = arith.constant 0 : i32
    %c0_i32_1 = arith.constant 0 : i32
    return %arg0, %c0_i32, %c0_i32_0 : i32, i32, i32
  }
  func.func @transform_1(%arg0: i32) -> (i32, i32) {
    %c0_i32 = arith.constant 0 : i32
    %c0_i32_0 = arith.constant 0 : i32
    %c0_i32_1 = arith.constant 0 : i32
    return %c0_i32, %c0_i32_0 : i32, i32
  }
  func.func @transform_2(%arg0: i32) -> (i32, i32, i32) {
    %c0_i32 = arith.constant 0 : i32
    %c0_i32_0 = arith.constant 0 : i32
    %c0_i32_1 = arith.constant 0 : i32
    return %arg0, %c0_i32, %c0_i32_0 : i32, i32, i32
  }
}

module attributes {stable_mosaic.version = 11 : i64} {
  func.func @_ln_kernel(%arg0: i32, %arg1: memref<16x32xf32, #tpu.memory_space<vmem>>, %arg2: memref<1x32xf32, #tpu.memory_space<vmem>>, %arg3: memref<1x32xf32, #tpu.memory_space<vmem>>, %arg4: memref<16x32xf32, #tpu.memory_space<vmem>>) attributes {dimension_semantics = [#tpu.dimension_semantics<parallel>], iteration_bounds = array<i64: 1>, scalar_prefetch = 0 : i64, scratch_operands = 0 : i64, tpu.core_type = #tpu.core_type<tc>, window_params = [{transform_indices = @transform_0, window_bounds = array<i64: 16, 32>}, {pipeline_mode = #tpu.pipeline_mode<synchronous>, transform_indices = @transform_1, window_bounds = array<i64: 1, 32>}, {pipeline_mode = #tpu.pipeline_mode<synchronous>, transform_indices = @transform_2, window_bounds = array<i64: 1, 32>}, {transform_indices = @transform_3, window_bounds = array<i64: 16, 32>}]} {
    %c0 = arith.constant 0 : index
    %c0_0 = arith.constant 0 : index
    %0 = vector.load %arg1[%c0, %c0_0] : memref<16x32xf32, #tpu.memory_space<vmem>>, vector<16x32xf32>
    %cst = arith.constant dense<0.000000e+00> : vector<16xf32>
    %1 = vector.multi_reduction <add>, %0, %cst [1] : vector<16x32xf32> to vector<16xf32>
    %2 = vector.shape_cast %1 : vector<16xf32> to vector<16x1xf32>
    %cst_1 = arith.constant 3.200000e+01 : f32
    %3 = vector.broadcast %cst_1 : f32 to vector<16x1xf32>
    %4 = arith.divf %2, %3 : vector<16x1xf32>
    %5 = vector.broadcast %4 : vector<16x1xf32> to vector<16x32xf32>
    %6 = arith.subf %0, %5 : vector<16x32xf32>
    %7 = arith.mulf %6, %6 : vector<16x32xf32>
    %cst_2 = arith.constant dense<0.000000e+00> : vector<16xf32>
    %8 = vector.multi_reduction <add>, %7, %cst_2 [1] : vector<16x32xf32> to vector<16xf32>
    %9 = vector.shape_cast %8 : vector<16xf32> to vector<16x1xf32>
    %cst_3 = arith.constant 3.200000e+01 : f32
    %10 = vector.broadcast %cst_3 : f32 to vector<16x1xf32>
    %11 = arith.divf %9, %10 : vector<16x1xf32>
    %12 = vector.broadcast %4 : vector<16x1xf32> to vector<16x32xf32>
    %13 = arith.subf %0, %12 : vector<16x32xf32>
    %cst_4 = arith.constant 9.99999974E-6 : f32
    %14 = vector.broadcast %cst_4 : f32 to vector<16x1xf32>
    %15 = arith.addf %11, %14 : vector<16x1xf32>
    %16 = math.rsqrt %15 : vector<16x1xf32>
    %17 = vector.broadcast %16 : vector<16x1xf32> to vector<16x32xf32>
    %18 = arith.mulf %13, %17 : vector<16x32xf32>
    %c0_5 = arith.constant 0 : index
    %c0_6 = arith.constant 0 : index
    %19 = vector.load %arg2[%c0_5, %c0_6] : memref<1x32xf32, #tpu.memory_space<vmem>>, vector<1x32xf32>
    %20 = vector.broadcast %19 : vector<1x32xf32> to vector<16x32xf32>
    %21 = arith.mulf %18, %20 : vector<16x32xf32>
    %c0_7 = arith.constant 0 : index
    %c0_8 = arith.constant 0 : index
    %22 = vector.load %arg3[%c0_7, %c0_8] : memref<1x32xf32, #tpu.memory_space<vmem>>, vector<1x32xf32>
    %23 = vector.broadcast %22 : vector<1x32xf32> to vector<16x32xf32>
    %24 = arith.addf %21, %23 : vector<16x32xf32>
    %c0_9 = arith.constant 0 : index
    %c0_10 = arith.constant 0 : index
    %25 = vector.load %arg4[%c0_9, %c0_10] : memref<16x32xf32, #tpu.memory_space<vmem>>, vector<16x32xf32>
    tpu.vector_store %arg4[%c0_9, %c0_10], %24 {strides = array<i32>} : memref<16x32xf32, #tpu.memory_space<vmem>>, vector<16x32xf32>,
    return
  }
  func.func @transform_0(%arg0: i32) -> (i32, i32) {
    %c0_i32 = arith.constant 0 : i32
    %c0_i32_0 = arith.constant 0 : i32
    return %arg0, %c0_i32 : i32, i32
  }
  func.func @transform_1(%arg0: i32) -> (i32, i32) {
    %c0_i32 = arith.constant 0 : i32
    %c0_i32_0 = arith.constant 0 : i32
    %c0_i32_1 = arith.constant 0 : i32
    return %c0_i32, %c0_i32_0 : i32, i32
  }
  func.func @transform_2(%arg0: i32) -> (i32, i32) {
    %c0_i32 = arith.constant 0 : i32
    %c0_i32_0 = arith.constant 0 : i32
    %c0_i32_1 = arith.constant 0 : i32
    return %c0_i32, %c0_i32_0 : i32, i32
  }
  func.func @transform_3(%arg0: i32) -> (i32, i32) {
    %c0_i32 = arith.constant 0 : i32
    %c0_i32_0 = arith.constant 0 : i32
    return %arg0, %c0_i32 : i32, i32
  }
}

module attributes {stable_mosaic.version = 11 : i64} {
  func.func @_ffn_kernel(%arg0: i32, %arg1: memref<16x32xf32, #tpu.memory_space<vmem>>, %arg2: memref<1x32xf32, #tpu.memory_space<vmem>>, %arg3: memref<1x32xf32, #tpu.memory_space<vmem>>, %arg4: memref<32x32xf32, #tpu.memory_space<vmem>>, %arg5: memref<1x32xf32, #tpu.memory_space<vmem>>, %arg6: memref<32x32xf32, #tpu.memory_space<vmem>>, %arg7: memref<1x32xf32, #tpu.memory_space<vmem>>, %arg8: memref<16x32xf32, #tpu.memory_space<vmem>>) attributes {dimension_semantics = [#tpu.dimension_semantics<parallel>], iteration_bounds = array<i64: 1>, scalar_prefetch = 0 : i64, scratch_operands = 0 : i64, tpu.core_type = #tpu.core_type<tc>, window_params = [{transform_indices = @transform_0, window_bounds = array<i64: 16, 32>}, {pipeline_mode = #tpu.pipeline_mode<synchronous>, transform_indices = @transform_1, window_bounds = array<i64: 1, 32>}, {pipeline_mode = #tpu.pipeline_mode<synchronous>, transform_indices = @transform_2, window_bounds = array<i64: 1, 32>}, {pipeline_mode = #tpu.pipeline_mode<synchronous>, transform_indices = @transform_3, window_bounds = array<i64: 32, 32>}, {pipeline_mode = #tpu.pipeline_mode<synchronous>, transform_indices = @transform_4, window_bounds = array<i64: 1, 32>}, {pipeline_mode = #tpu.pipeline_mode<synchronous>, transform_indices = @transform_5, window_bounds = array<i64: 32, 32>}, {pipeline_mode = #tpu.pipeline_mode<synchronous>, transform_indices = @transform_6, window_bounds = array<i64: 1, 32>}, {transform_indices = @transform_7, window_bounds = array<i64: 16, 32>}]} {
    %c0 = arith.constant 0 : index
    %c0_0 = arith.constant 0 : index
    %0 = vector.load %arg1[%c0, %c0_0] : memref<16x32xf32, #tpu.memory_space<vmem>>, vector<16x32xf32>
    %cst = arith.constant dense<0.000000e+00> : vector<16xf32>
    %1 = vector.multi_reduction <add>, %0, %cst [1] : vector<16x32xf32> to vector<16xf32>
    %2 = vector.shape_cast %1 : vector<16xf32> to vector<16x1xf32>
    %cst_1 = arith.constant 3.200000e+01 : f32
    %3 = vector.broadcast %cst_1 : f32 to vector<16x1xf32>
    %4 = arith.divf %2, %3 : vector<16x1xf32>
    %5 = vector.broadcast %4 : vector<16x1xf32> to vector<16x32xf32>
    %6 = arith.subf %0, %5 : vector<16x32xf32>
    %7 = arith.mulf %6, %6 : vector<16x32xf32>
    %cst_2 = arith.constant dense<0.000000e+00> : vector<16xf32>
    %8 = vector.multi_reduction <add>, %7, %cst_2 [1] : vector<16x32xf32> to vector<16xf32>
    %9 = vector.shape_cast %8 : vector<16xf32> to vector<16x1xf32>
    %cst_3 = arith.constant 3.200000e+01 : f32
    %10 = vector.broadcast %cst_3 : f32 to vector<16x1xf32>
    %11 = arith.divf %9, %10 : vector<16x1xf32>
    %12 = vector.broadcast %4 : vector<16x1xf32> to vector<16x32xf32>
    %13 = arith.subf %0, %12 : vector<16x32xf32>
    %cst_4 = arith.constant 9.99999974E-6 : f32
    %14 = vector.broadcast %cst_4 : f32 to vector<16x1xf32>
    %15 = arith.addf %11, %14 : vector<16x1xf32>
    %16 = math.rsqrt %15 : vector<16x1xf32>
    %17 = vector.broadcast %16 : vector<16x1xf32> to vector<16x32xf32>
    %18 = arith.mulf %13, %17 : vector<16x32xf32>
    %c0_5 = arith.constant 0 : index
    %c0_6 = arith.constant 0 : index
    %19 = vector.load %arg2[%c0_5, %c0_6] : memref<1x32xf32, #tpu.memory_space<vmem>>, vector<1x32xf32>
    %20 = vector.broadcast %19 : vector<1x32xf32> to vector<16x32xf32>
    %21 = arith.mulf %18, %20 : vector<16x32xf32>
    %c0_7 = arith.constant 0 : index
    %c0_8 = arith.constant 0 : index
    %22 = vector.load %arg3[%c0_7, %c0_8] : memref<1x32xf32, #tpu.memory_space<vmem>>, vector<1x32xf32>
    %23 = vector.broadcast %22 : vector<1x32xf32> to vector<16x32xf32>
    %24 = arith.addf %21, %23 : vector<16x32xf32>
    %c0_9 = arith.constant 0 : index
    %c0_10 = arith.constant 0 : index
    %25 = vector.load %arg4[%c0_9, %c0_10] : memref<32x32xf32, #tpu.memory_space<vmem>>, vector<32x32xf32>
    %cst_11 = arith.constant dense<0.000000e+00> : vector<16x32xf32>
    %26 = tpu.matmul %24, %25, %cst_11 {dimension_numbers = #tpu.dot_dimension_numbers<[1], [0], [0], [1], [0, 0, 1, 1], [], []>} : vector<16x32xf32>, vector<32x32xf32>, vector<16x32xf32> -> vector<16x32xf32>
    %c0_12 = arith.constant 0 : index
    %c0_13 = arith.constant 0 : index
    %27 = vector.load %arg5[%c0_12, %c0_13] : memref<1x32xf32, #tpu.memory_space<vmem>>, vector<1x32xf32>
    %28 = vector.broadcast %27 : vector<1x32xf32> to vector<16x32xf32>
    %29 = arith.addf %26, %28 : vector<16x32xf32>
    %cst_14 = arith.constant 0.000000e+00 : f32
    %30 = vector.broadcast %cst_14 : f32 to vector<16x32xf32>
    %31 = arith.maximumf %29, %30 : vector<16x32xf32>
    %c0_15 = arith.constant 0 : index
    %c0_16 = arith.constant 0 : index
    %32 = vector.load %arg6[%c0_15, %c0_16] : memref<32x32xf32, #tpu.memory_space<vmem>>, vector<32x32xf32>
    %cst_17 = arith.constant dense<0.000000e+00> : vector<16x32xf32>
    %33 = tpu.matmul %31, %32, %cst_17 {dimension_numbers = #tpu.dot_dimension_numbers<[1], [0], [0], [1], [0, 0, 1, 1], [], []>} : vector<16x32xf32>, vector<32x32xf32>, vector<16x32xf32> -> vector<16x32xf32>
    %34 = arith.addf %0, %33 : vector<16x32xf32>
    %c0_18 = arith.constant 0 : index
    %c0_19 = arith.constant 0 : index
    %35 = vector.load %arg7[%c0_18, %c0_19] : memref<1x32xf32, #tpu.memory_space<vmem>>, vector<1x32xf32>
    %36 = vector.broadcast %35 : vector<1x32xf32> to vector<16x32xf32>
    %37 = arith.addf %34, %36 : vector<16x32xf32>
    %c0_20 = arith.constant 0 : index
    %c0_21 = arith.constant 0 : index
    %38 = vector.load %arg8[%c0_20, %c0_21] : memref<16x32xf32, #tpu.memory_space<vmem>>, vector<16x32xf32>
    tpu.vector_store %arg8[%c0_20, %c0_21], %37 {strides = array<i32>} : memref<16x32xf32, #tpu.memory_space<vmem>>, vector<16x32xf32>,
    return
  }
  func.func @transform_0(%arg0: i32) -> (i32, i32) {
    %c0_i32 = arith.constant 0 : i32
    %c0_i32_0 = arith.constant 0 : i32
    return %arg0, %c0_i32 : i32, i32
  }
  func.func @transform_1(%arg0: i32) -> (i32, i32) {
    %c0_i32 = arith.constant 0 : i32
    %c0_i32_0 = arith.constant 0 : i32
    %c0_i32_1 = arith.constant 0 : i32
    return %c0_i32, %c0_i32_0 : i32, i32
  }
  func.func @transform_2(%arg0: i32) -> (i32, i32) {
    %c0_i32 = arith.constant 0 : i32
    %c0_i32_0 = arith.constant 0 : i32
    %c0_i32_1 = arith.constant 0 : i32
    return %c0_i32, %c0_i32_0 : i32, i32
  }
  func.func @transform_3(%arg0: i32) -> (i32, i32) {
    %c0_i32 = arith.constant 0 : i32
    %c0_i32_0 = arith.constant 0 : i32
    %c0_i32_1 = arith.constant 0 : i32
    return %c0_i32, %c0_i32_0 : i32, i32
  }
  func.func @transform_4(%arg0: i32) -> (i32, i32) {
    %c0_i32 = arith.constant 0 : i32
    %c0_i32_0 = arith.constant 0 : i32
    %c0_i32_1 = arith.constant 0 : i32
    return %c0_i32, %c0_i32_0 : i32, i32
  }
  func.func @transform_5(%arg0: i32) -> (i32, i32) {
    %c0_i32 = arith.constant 0 : i32
    %c0_i32_0 = arith.constant 0 : i32
    %c0_i32_1 = arith.constant 0 : i32
    return %c0_i32, %c0_i32_0 : i32, i32
  }
  func.func @transform_6(%arg0: i32) -> (i32, i32) {
    %c0_i32 = arith.constant 0 : i32
    %c0_i32_0 = arith.constant 0 : i32
    %c0_i32_1 = arith.constant 0 : i32
    return %c0_i32, %c0_i32_0 : i32, i32
  }
  func.func @transform_7(%arg0: i32) -> (i32, i32) {
    %c0_i32 = arith.constant 0 : i32
    %c0_i32_0 = arith.constant 0 : i32
    return %arg0, %c0_i32 : i32, i32
  }
}

</mosaic_0001>

<bundles_post_ra>
// kernel: transformer_encoder.6
= control target key start
LH: loop header
LB: loop body
LE: loop exit
PB: predicated region body
PF: predicated region fallthrough
CT: control target
= control target key end

     0   :  { %s226_s9 = smov 0   ;;  %s254_s0 = inlined_call_operand.vmem [shape: f32[2,8,32], index: 0, kind: input, shape index: {}]   ;;  %s255_s1 = inlined_call_operand.vmem [shape: f32[2,32], index: 1, kind: input, shape index: {}]   ;;  %s256_s2 = inlined_call_operand.vmem [shape: f32[2,8,32], index: 2, kind: output, shape index: {}]  }
   0x1 LB: > { %s204_s10 = sadd.s32 4294967295, %s228_s9   ;;  %p208_p0 = scmp.ge.s32.totalorder %s228_s9, 1  ;;  %s228_s9 = sphi %s226_s9, %s12_s9  }
   0x2   : > { %p111_p1 = scmp.lt.s32.totalorder %s228_s9, 3 }
   0x4   : > { %p112_p2 = pnand %p208_p0, %p111_p1 }
   0x5   : > { %p131_p3 = scmp.lt.s32.totalorder (!%p112_p2), %s204_s10, 1  ;;  %s141_s14 = scalar_lea.vmem (!%p112_p2), %s255_s1, %s204_s10 }
   0x6   : > { %115 = sbr.rel (%p112_p2) target bundleno = 21 (0x15), region = 28 }
   0xb   : > { %s132_s11 = scalar_select %p131_p3, %s204_s10, 1  ;;  %v211_v1 = vld [vmem:[%s141_s14] ss:$0 sm:$0xff]  ;;  %vm148_vm0 = vcmask 261120  }
   0xd   : > { %s209_s15 = sshll.u32 %s132_s11, 3 }
   0xe   : > { %s134_s18 = scalar_lea.vmem %s254_s0, %s209_s15  ;;  %s138_s21 = scalar_lea.vmem %s256_s2, %s209_s15 }
   0xf   : > { %v139_v0 = vld [vmem:[%s134_s18] sm:$0xff] }
  0x10   : > { %v140_v2 = vmul.f32 5.656854, %v139_v0 }
  0x12   : > { %v147_v3 = vadd.f32 %v211_v1, %v140_v2 }
  0x14   : > { %149 = vst.msk [vmem:[%s138_s21] sm:$0xff] %vm148_vm0, %v147_v3 }
  0x15 PF: > { %s12_s9 = sadd.s32 1, %s228_s9  }
  0x16   : > { %p9_p4 = scmp.ge.s32.totalorder %s12_s9, 4  }
  0x18   :  { %11 = sbr.rel (!%p9_p4) target bundleno = 1 (0x1), region = 59 }

// kernel: transformer_encoder.11
= control target key start
LH: loop header
LB: loop body
LE: loop exit
PB: predicated region body
PF: predicated region fallthrough
CT: control target
= control target key end

     0   :  { %vm16_vm0 = vcmask 261120   ;;  %s118_s0 = inlined_call_operand.vmem [shape: f32[16,32], index: 0, kind: input, shape index: {}]   ;;  %s119_s1 = inlined_call_operand.vmem [shape: f32[1,32], index: 1, kind: input, shape index: {}]   ;;  %s120_s2 = inlined_call_operand.vmem [shape: f32[1,32], index: 2, kind: input, shape index: {}]   ;;  %s121_s3 = inlined_call_operand.vmem [shape: f32[16,32], index: 3, kind: output, shape index: {}]  }
   0x1   :  { %v14_v0 = vld [vmem:[%s118_s0] sm:$0xff]  ;;  %v15_v1 = vld [vmem:[%s118_s0 + $0x8] sm:$0xff] }
   0x2   :  { %v17_v2 = vsel %vm16_vm0, %v14_v0, 0.0  ;;  %v20_v3 = vsel %vm16_vm0, %v15_v1, 0.0  ;;  %v68_v21 = vld [vmem:[%s119_s1] ss:$0 sm:$0xff] }
   0x3   :  { %18 = vadd.xlane.f32.xlu0 %v17_v2  ;;  %v69_v23 = vld [vmem:[%s120_s2] ss:$0 sm:$0xff] }
   0x7   :  { %21 = vadd.xlane.f32.xlu0 %v20_v3 }
  0x8c   :  { %v19_v4 = vpop.xlane.xlu0 %18 }
  0x8d   :  { %v24_v5 = vmul.f32 0.03125, %v19_v4 }
  0x8f   :  { %v26_v6 = vsub.f32 %v14_v0, %v24_v5 }
  0x90   :  { %v22_v7 = vpop.xlane.xlu0 %21 }
  0x91   :  { %v25_v8 = vmul.f32 0.03125, %v22_v7  ;;  %v28_v9 = vmul.f32 %v26_v6, %v26_v6 }
  0x93   :  { %v27_v10 = vsub.f32 %v15_v1, %v25_v8  ;;  %v30_v11 = vsel %vm16_vm0, %v28_v9, 0.0 }
  0x94   :  { %31 = vadd.xlane.f32.xlu1 %v30_v11 }
  0x95   :  { %v29_v12 = vmul.f32 %v27_v10, %v27_v10 }
  0x97   :  { %v33_v13 = vsel %vm16_vm0, %v29_v12, 0.0 }
  0x98   :  { %34 = vadd.xlane.f32.xlu1 %v33_v13 }
 0x11d   :  { %v32_v14 = vpop.xlane.xlu1 %31 }
 0x11e   :  { %v36_v15 = vmul.f32 0.03125, %v32_v14 }
 0x120   :  { %v38_v16 = vadd.f32 1e-05, %v36_v15 }
 0x121   :  { %v35_v17 = vpop.xlane.xlu1 %34 }
 0x122   :  { %70 = vrsqrt.f32 %v38_v16  ;;  %v37_v18 = vmul.f32 0.03125, %v35_v17 }
 0x124   :  { %v39_v19 = vadd.f32 1e-05, %v37_v18 }
 0x126   :  { %72 = vrsqrt.f32 %v39_v19 }
 0x12f   :  { %v71_v20 = vpop.eup %70 }
 0x130   :  { %v42_v22 = vmul.f32 %v71_v20, %v26_v6 }
 0x132   :  { %v51_v24 = vmul.f32 %v68_v21, %v42_v22 }
 0x133   :  { %v73_v25 = vpop.eup %72 }
 0x134   :  { %v60_v26 = vadd.f32 %v69_v23, %v51_v24  ;;  %v43_v27 = vmul.f32 %v73_v25, %v27_v10 }
 0x136   :  { %62 = vst.msk [vmem:[%s121_s3] sm:$0xff] %vm16_vm0, %v60_v26  ;;  %v52_v28 = vmul.f32 %v68_v21, %v43_v27 }
 0x138   :  { %v61_v29 = vadd.f32 %v69_v23, %v52_v28 }
 0x13a   :  { %63 = vst.msk [vmem:[%s121_s3 + $0x8] sm:$0xff] %vm16_vm0, %v61_v29 }

// kernel: transformer_encoder.7
= control target key start
LH: loop header
LB: loop body
LE: loop exit
PB: predicated region body
PF: predicated region fallthrough
CT: control target
= control target key end

     0   :  { %s1648_s24 = smov 0   ;;  %s1800_s0 = inlined_call_operand.vmem [shape: f32[2,8,32], index: 0, kind: input, shape index: {}, may-alias: {0,7}]   ;;  %s1801_s1 = inlined_call_operand.vmem [shape: f32[1,32], index: 1, kind: input, shape index: {}]   ;;  %s1802_s2 = inlined_call_operand.vmem [shape: f32[1,32], index: 2, kind: input, shape index: {}]   ;;  %s1803_s3 = inlined_call_operand.vmem [shape: f32[32,96], index: 3, kind: input, shape index: {}]   ;;  %s1804_s4 = inlined_call_operand.vmem [shape: f32[1,96], index: 4, kind: input, shape index: {}]   ;;  %s1805_s5 = inlined_call_operand.vmem [shape: f32[32,32], index: 5, kind: input, shape index: {}]   ;;  %s1806_s6 = inlined_call_operand.vmem [shape: f32[1,32], index: 6, kind: input, shape index: {}]   ;;  %s1807_s7 = inlined_call_operand.vmem [shape: f32[2,8,32], index: 7, kind: output, shape index: {}, may-alias: {0,7}]  }
   0x1 LB: > { %s1418_s25 = sadd.s32 4294967295, %s1593_s24   ;;  %p1422_p0 = scmp.ge.s32.totalorder %s1593_s24, 1  ;;  %s1593_s24 = sphi %s1648_s24, %s17_s24  }
   0x2   : > { %p236_p1 = scmp.lt.s32.totalorder %s1593_s24, 3 }
   0x4   : > { %p237_p2 = pnand %p1422_p0, %p236_p1 }
   0x5   : > { %p266_p3 = scmp.lt.s32.totalorder (!%p237_p2), %s1418_s25, 1  ;;  %s1597_s21 = smov (!%p237_p2), 64  }
   0x6   : > { %240 = sbr.rel (%p237_p2) target bundleno = 3065 (0xbf9), region = 48  ;;  %s1598_s22 = smov (!%p237_p2), 96  }
   0x7   : > { %s1599_s23 = smov (!%p237_p2), 88   ;;  %s1600_s27 = smov (!%p237_p2), 120  }
   0x8   : > { %s1601_s30 = smov (!%p237_p2), 56   ;;  %s1602_s8 = smov (!%p237_p2), 80  }
   0x9   : > { %s1603_s9 = smov (!%p237_p2), 112   ;;  %s1604_s10 = smov (!%p237_p2), 48  }
   0xa   : > { %s1605_s15 = smov (!%p237_p2), 72   ;;  %s1606_s16 = smov (!%p237_p2), 104  }
   0xb   : > { %s1809_s25 = smov (!%p266_p3, %s1418_s25), 1  ;;  %vm275_vm0 = vcmask 261120   ;;  %v309_v7 = vld [vmem:[%s1803_s3 + $0x18] sm:$0xff]  ;;  %v1595_v8 = vmov 0.0   ;;  %v308_v9 = vld [vmem:[%s1803_s3 + $0x10] sm:$0xff]  ;;  %vm1596_vm1 = vmmov 0  }
   0xc   : > { %s1423_s26 = sshll.u32 %s1809_s25, 3  ;;  %1477 = vmatprep.subr.mxu0 %v1595_v8  ;;  %1485 = vmatprep.mubr.msk.f32.mxu0 %vm1596_vm1, %v1595_v8  ;;  %v307_v10 = vld [vmem:[%s1803_s3 + $0x8] sm:$0xff]  ;;  %v306_v11 = vld [vmem:[%s1803_s3] sm:$0xff]  ;;  %vm402_vm2 = vcmask 64512   ;;  %s1607_s19 = smov 40  }
   0xd   : > { %s269_s29 = scalar_lea.vmem %s1800_s0, %s1423_s26  ;;  %1478 = vmatpush3.msra.mxu0 %v309_v7  ;;  %1488 = vmatprep.subr.mxu1 %v1595_v8  ;;  %v1425_v16 = vld [vmem:[%s1801_s1] ss:$0 sm:$0xff]  ;;  %v807_v57 = vld [vmem:[%s1805_s5 + $0x8] sm:$0xff] }
   0xe   : > { %v1664_v0 = vld [vmem:[%s269_s29] sm:$0xff]  ;;  %1479 = vmatprep.subr.mxu0 %v1595_v8  ;;  %1490 = vmatprep.mubr.msk.f32.mxu1 %vm1596_vm1, %v1595_v8 }
   0xf   : > { %v276_v1 = vsel %vm275_vm0, %v1664_v0, 0.0  ;;  %1480 = vmatpush3.msra.mxu0 %v308_v9  ;;  %v1426_v18 = vld [vmem:[%s1802_s2] ss:$0 sm:$0xff] }
  0x10   : > { %277 = vadd.xlane.f32.xlu0 %v276_v1  ;;  %1481 = vmatprep.subr.mxu0 %v1595_v8  ;;  %v1427_v21 = vld [vmem:[%s1804_s4] ss:$0 sm:$0xff] }
  0x11   : > { %1482 = vmatpush3.msra.mxu0 %v307_v10  ;;  %v566_v42 = vld [vmem:[%s1805_s5] sm:$0xff] }
  0x12   : > { %1483 = vmatprep.subr.mxu0 %v1595_v8 }
  0x13   : > { %1484 = vmatpush3.msra.mxu0 %v306_v11 }
  0x14   : > { %1498 = vmatprep.subr.mxu0 %v1595_v8 }
  0x99   : > { %v278_v2 = vpop.xlane.xlu0 %277 }
  0x9a   : > { %v280_v3 = vmul.f32 0.03125, %v278_v2 }
  0x9c   : > { %v281_v4 = vsub.f32 %v1664_v0, %v280_v3 }
  0x9e   : > { %v282_v5 = vmul.f32 %v281_v4, %v281_v4 }
  0xa0   : > { %v283_v6 = vsel %vm275_vm0, %v282_v5, 0.0 }
  0xa1   : > { %284 = vadd.xlane.f32.xlu0 %v283_v6 }
 0x12a   : > { %v285_v12 = vpop.xlane.xlu0 %284 }
 0x12b   : > { %v286_v13 = vmul.f32 0.03125, %v285_v12 }
 0x12d   : > { %v287_v14 = vadd.f32 1e-05, %v286_v13  ;;  %v1429_v13 = vld [vmem:[%s1806_s6] ss:$0 sm:$0xff] }
 0x12f   : > { %1569 = vrsqrt.f32 %v287_v14  ;;  %v397_v14 = vadd.f32 %v1429_v13, %v1664_v0 }
 0x13c   : > { %v1570_v15 = vpop.eup %1569 }
 0x13d   : > { %v289_v17 = vmul.f32 %v1570_v15, %v281_v4 }
 0x13f   : > { %v297_v19 = vmul.f32 %v1425_v16, %v289_v17 }
 0x141   : > { %v305_v20 = vadd.f32 %v1426_v18, %v297_v19 }
 0x143   : > { %1486 = vmatmul.mubr.msk.f32.vlgmr.msra.gmra.mxu0 %vm275_vm0, %v305_v20 }
 0x144   : > { %1500 = vmatprep.mubr.msk.f32.mxu0 %vm1596_vm1, %v1595_v8  ;;  %1499 = vmatpush3.msra.mxu0 %v566_v42 }
 0x145   : > { %1508 = vmatprep.subr.mxu0 %v1595_v8 }
 0x203   : > { %v386_v22 = vpop.f32.mrf.mxu0 }
 0x204   : > { %v1704_v23 = vadd.f32 %v1427_v21, %v386_v22 }
 0x205   : > { %v1487_v24 = vpop.f32.mrf.mxu0 }
 0x206   : > { %490 = vrot.lane.b32.xlu0 %v1704_v23, %s1597_s21  ;;  %400 = vrot.lane.b32.xlu1 %v1704_v23, %s1598_s22  ;;  %v1710_v26 = vmul.f32 0.35355338, %v1704_v23  ;;  %v1048_v24 = vld [vmem:[%s1805_s5 + $0x10] sm:$0xff] }
 0x278   : > { %v401_v25 = vpop.permute.xlu1 %400  ;;  %v491_v27 = vpop.permute.xlu0 %490 }
 0x279   : > { %1489 = vmatpush3.xpose.msk.msra.mxu1 %vm402_vm2, %v401_v25 }
 0x27a   : > { %1493 = vmatprep.subr.mxu1 %v1595_v8 }
 0x27c   : > { %1491 = vmatmul.mubr.msk.f32.vlgmr.msra.gmra.mxu1 %vm402_vm2, %v1710_v26 }
 0x27d   : > { %1494 = vmatpush3.msra.mxu1 %v491_v27  ;;  %1495 = vmatprep.mubr.msk.f32.mxu1 %vm1596_vm1, %v1595_v8 }
 0x27e   : > { %1503 = vmatprep.subr.mxu1 %v1595_v8 }
 0x33c   : > { %v474_v28 = vpop.f32.mrf.mxu1 }
 0x33d   : > { %v478_v29 = vmul.f32 0.35355338, %v474_v28 }
 0x33e   : > { %v1492_v30 = vpop.f32.mrf.mxu1 }
 0x33f   : > { %v479_v31 = vsel %vm402_vm2, %v478_v29, -inf }
 0x340   : > { %480 = vmax.xlane.f32.xlu1 %v479_v31 }
 0x3c9   : > { %v481_v32 = vpop.xlane.xlu1 %480 }
 0x3ca   : > { %v482_v33 = vsub.f32 %v478_v29, %v481_v32 }
 0x3cc   : > { %v483_v34 = vmul.f32 1.442695, %v482_v33 }
 0x3ce   : > { %1571 = vpow2.f32 %v483_v34 }
 0x3db   : > { %v1572_v35 = vpop.eup %1571 }
 0x3dc   : > { %v485_v36 = vsel %vm402_vm2, %v1572_v35, 0.0 }
 0x3dd   : > { %486 = vadd.xlane.f32.xlu0 %v485_v36 }
 0x3f3   : > { %643 = vrot.lane.b32.xlu0 %v1704_v23, %s1599_s23 }
 0x3f7   : > { %641 = vrot.lane.b32.xlu0 %v1710_v26, %s1600_s27  ;;  %s273_s27 = scalar_lea.vmem %s1807_s7, %s1423_s26 }
 0x466   : > { %v487_v37 = vpop.xlane.xlu0 %486 }
 0x467   : > { %1573 = vrcp.f32 %v487_v37 }
 0x46a   : > { %v644_v39 = vpop.permute.xlu0 %643 }
 0x46e   : > { %v642_v41 = vpop.permute.xlu0 %641 }
 0x474   : > { %v1574_v38 = vpop.eup %1573 }
 0x475   : > { %v489_v40 = vmul.f32 %v1574_v38, %v1572_v35 }
 0x477   : > { %1496 = vmatmul.mubr.msk.f32.vlgmr.msra.gmra.mxu1 %vm402_vm2, %v489_v40 }
 0x478   : > { %1504 = vmatpush3.xpose.msk.msra.mxu1 %vm402_vm2, %v644_v39  ;;  %1505 = vmatprep.mubr.msk.f32.mxu1 %vm1596_vm1, %v1595_v8 }
 0x479   : > { %1513 = vmatprep.subr.mxu1 %v1595_v8 }
 0x47b   : > { %1506 = vmatmul.mubr.msk.f32.vlgmr.msra.gmra.mxu1 %vm402_vm2, %v642_v41 }
 0x47c   : > { %1515 = vmatprep.mubr.msk.f32.mxu1 %vm1596_vm1, %v1595_v8  ;;  %1514 = vmatpush3.msra.mxu1 %v807_v57 }
 0x47d   : > { %1523 = vmatprep.subr.mxu1 %v1595_v8 }
 0x537   : > { %v562_v43 = vpop.f32.mrf.mxu1 }
 0x538   : > { %1501 = vmatmul.mubr.msk.f32.vlgmr.msra.gmra.mxu0 %vm402_vm2, %v562_v43 }
 0x539   : > { %v1497_v44 = vpop.f32.mrf.mxu1  ;;  %1510 = vmatprep.mubr.msk.f32.mxu0 %vm1596_vm1, %v1595_v8 }
 0x53b   : > { %v715_v45 = vpop.f32.mrf.mxu1 }
 0x53c   : > { %v719_v46 = vmul.f32 0.35355338, %v715_v45 }
 0x53d   : > { %v1507_v47 = vpop.f32.mrf.mxu1 }
 0x53e   : > { %v720_v48 = vsel %vm402_vm2, %v719_v46, -inf }
 0x53f   : > { %721 = vmax.xlane.f32.xlu1 %v720_v48 }
 0x550   : > { %731 = vrot.lane.b32.xlu1 %v1704_v23, %s1601_s30 }
 0x554   : > { %884 = vrot.lane.b32.xlu1 %v1704_v23, %s1602_s8 }
 0x558   : > { %882 = vrot.lane.b32.xlu1 %v1710_v26, %s1603_s9 }
 0x5c8   : > { %v722_v49 = vpop.xlane.xlu1 %721 }
 0x5c9   : > { %v723_v50 = vsub.f32 %v719_v46, %v722_v49 }
 0x5cb   : > { %v724_v51 = vmul.f32 1.442695, %v723_v50 }
 0x5cc   : > { %v732_v52 = vpop.permute.xlu1 %731 }
 0x5cd   : > { %1575 = vpow2.f32 %v724_v51  ;;  %1509 = vmatpush3.msra.mxu0 %v732_v52 }
 0x5ce   : > { %1518 = vmatprep.subr.mxu0 %v1595_v8 }
 0x5d0   : > { %v885_v60 = vpop.permute.xlu1 %884 }
 0x5d4   : > { %v883_v62 = vpop.permute.xlu1 %882 }
 0x5da   : > { %v1576_v53 = vpop.eup %1575 }
 0x5db   : > { %v726_v54 = vsel %vm402_vm2, %v1576_v53, 0.0 }
 0x5dc   : > { %727 = vadd.xlane.f32.xlu0 %v726_v54 }
 0x5f2   : > { %972 = vrot.lane.b32.xlu0 %v1704_v23, %s1604_s10 }
 0x5f8   : > { %v636_v55 = vpop.f32.mrf.mxu0 }
 0x5f9   : > { %v640_v15 = vadd.f32 %v636_v55, %v397_v14 }
 0x5fa   : > { %v1502_v56 = vpop.f32.mrf.mxu0 }
 0x665   : > { %v728_v58 = vpop.xlane.xlu0 %727 }
 0x666   : > { %1577 = vrcp.f32 %v728_v58 }
 0x669   : > { %v973_v1 = vpop.permute.xlu0 %972 }
 0x673   : > { %v1578_v59 = vpop.eup %1577 }
 0x674   : > { %v730_v61 = vmul.f32 %v1578_v59, %v1576_v53 }
 0x676   : > { %1511 = vmatmul.mubr.msk.f32.vlgmr.msra.gmra.mxu0 %vm402_vm2, %v730_v61 }
 0x677   : > { %1519 = vmatpush3.xpose.msk.msra.mxu0 %vm402_vm2, %v885_v60  ;;  %1520 = vmatprep.mubr.msk.f32.mxu0 %vm1596_vm1, %v1595_v8 }
 0x678   : > { %1528 = vmatprep.subr.mxu0 %v1595_v8 }
 0x67a   : > { %1521 = vmatmul.mubr.msk.f32.vlgmr.msra.gmra.mxu0 %vm402_vm2, %v883_v62 }
 0x67b   : > { %1530 = vmatprep.mubr.msk.f32.mxu0 %vm1596_vm1, %v1595_v8  ;;  %1529 = vmatpush3.msra.mxu0 %v1048_v24 }
 0x67c   : > { %1538 = vmatprep.subr.mxu0 %v1595_v8 }
 0x736   : > { %v803_v63 = vpop.f32.mrf.mxu0 }
 0x737   : > { %1516 = vmatmul.mubr.msk.f32.vlgmr.msra.gmra.mxu1 %vm402_vm2, %v803_v63 }
 0x738   : > { %1524 = vmatpush3.msra.mxu1 %v973_v1  ;;  %v1512_v2 = vpop.f32.mrf.mxu0  ;;  %1525 = vmatprep.mubr.msk.f32.mxu1 %vm1596_vm1, %v1595_v8 }
 0x739   : > { %1533 = vmatprep.subr.mxu1 %v1595_v8 }
 0x73a   : > { %v956_v3 = vpop.f32.mrf.mxu0 }
 0x73b   : > { %v960_v4 = vmul.f32 0.35355338, %v956_v3 }
 0x73c   : > { %v1522_v5 = vpop.f32.mrf.mxu0 }
 0x73d   : > { %v961_v6 = vsel %vm402_vm2, %v960_v4, -inf }
 0x73e   : > { %962 = vmax.xlane.f32.xlu1 %v961_v6 }
 0x7c7   : > { %v963_v7 = vpop.xlane.xlu1 %962 }
 0x7c8   : > { %v964_v9 = vsub.f32 %v960_v4, %v963_v7 }
 0x7ca   : > { %v965_v10 = vmul.f32 1.442695, %v964_v9 }
 0x7cc   : > { %1579 = vpow2.f32 %v965_v10 }
 0x7d9   : > { %v1580_v11 = vpop.eup %1579 }
 0x7da   : > { %v967_v12 = vsel %vm402_vm2, %v1580_v11, 0.0 }
 0x7db   : > { %968 = vadd.xlane.f32.xlu0 %v967_v12 }
 0x7f1   : > { %1125 = vrot.lane.b32.xlu0 %v1704_v23, %s1605_s15 }
 0x7f5   : > { %1123 = vrot.lane.b32.xlu0 %v1710_v26, %s1606_s16 }
 0x7f7   : > { %v877_v16 = vpop.f32.mrf.mxu1 }
 0x7f8   : > { %v881_v17 = vadd.f32 %v877_v16, %v640_v15 }
 0x7f9   : > { %v1517_v18 = vpop.f32.mrf.mxu1 }
 0x864   : > { %v969_v19 = vpop.xlane.xlu0 %968 }
 0x865   : > { %1581 = vrcp.f32 %v969_v19 }
 0x868   : > { %v1126_v21 = vpop.permute.xlu0 %1125 }
 0x86c   : > { %v1124_v0 = vpop.permute.xlu0 %1123 }
 0x872   : > { %v1582_v20 = vpop.eup %1581 }
 0x873   : > { %v971_v22 = vmul.f32 %v1582_v20, %v1580_v11 }
 0x875   : > { %1526 = vmatmul.mubr.msk.f32.vlgmr.msra.gmra.mxu1 %vm402_vm2, %v971_v22 }
 0x876   : > { %1534 = vmatpush3.xpose.msk.msra.mxu1 %vm402_vm2, %v1126_v21  ;;  %1535 = vmatprep.mubr.msk.f32.mxu1 %vm1596_vm1, %v1595_v8 }
 0x877   : > { %1543 = vmatprep.subr.mxu1 %v1595_v8 }
 0x879   : > { %1536 = vmatmul.mubr.msk.f32.vlgmr.msra.gmra.mxu1 %vm402_vm2, %v1124_v0 }
 0x87a   : > { %1545 = vmatprep.mubr.msk.f32.mxu1 %vm1596_vm1, %v1595_v8 }
 0x935   : > { %v1044_v25 = vpop.f32.mrf.mxu1 }
 0x936   : > { %1531 = vmatmul.mubr.msk.f32.vlgmr.msra.gmra.mxu0 %vm402_vm2, %v1044_v25 }
 0x937   : > { %v1527_v26 = vpop.f32.mrf.mxu1  ;;  %1540 = vmatprep.mubr.msk.f32.mxu0 %vm1596_vm1, %v1595_v8  ;;  %v1289_v8 = vld [vmem:[%s1805_s5 + $0x18] sm:$0xff] }
 0x938   : > { %1544 = vmatpush3.msra.mxu1 %v1289_v8 }
 0x939   : > { %v1197_v27 = vpop.f32.mrf.mxu1 }
 0x93a   : > { %v1201_v28 = vmul.f32 0.35355338, %v1197_v27 }
 0x93b   : > { %v1537_v29 = vpop.f32.mrf.mxu1 }
 0x93c   : > { %v1202_v30 = vsel %vm402_vm2, %v1201_v28, -inf }
 0x93d   : > { %1203 = vmax.xlane.f32.xlu1 %v1202_v30 }
 0x94e   : > { %1213 = vrot.lane.b32.xlu1 %v1704_v23, %s1607_s19 }
 0x9c6   : > { %v1204_v31 = vpop.xlane.xlu1 %1203 }
 0x9c7   : > { %v1205_v32 = vsub.f32 %v1201_v28, %v1204_v31 }
 0x9c9   : > { %v1206_v33 = vmul.f32 1.442695, %v1205_v32 }
 0x9ca   : > { %v1214_v34 = vpop.permute.xlu1 %1213 }
 0x9cb   : > { %1583 = vpow2.f32 %v1206_v33  ;;  %1539 = vmatpush3.msra.mxu0 %v1214_v34 }
 0x9d8   : > { %v1584_v35 = vpop.eup %1583 }
 0x9d9   : > { %v1208_v36 = vsel %vm402_vm2, %v1584_v35, 0.0 }
 0x9da   : > { %1209 = vadd.xlane.f32.xlu0 %v1208_v36 }
 0x9f6   : > { %v1118_v37 = vpop.f32.mrf.mxu0 }
 0x9f7   : > { %v1122_v38 = vadd.f32 %v1118_v37, %v881_v17 }
 0x9f8   : > { %v1532_v39 = vpop.f32.mrf.mxu0 }
 0xa63   : > { %v1210_v23 = vpop.xlane.xlu0 %1209 }
 0xa64   : > { %1585 = vrcp.f32 %v1210_v23 }
 0xa71   : > { %v1586_v40 = vpop.eup %1585 }
 0xa72   : > { %v1212_v41 = vmul.f32 %v1586_v40, %v1584_v35 }
 0xa74   : > { %1541 = vmatmul.mubr.msk.f32.vlgmr.msra.gmra.mxu0 %vm402_vm2, %v1212_v41 }
 0xb34   : > { %v1285_v42 = vpop.f32.mrf.mxu0 }
 0xb35   : > { %1546 = vmatmul.mubr.msk.f32.vlgmr.msra.gmra.mxu1 %vm402_vm2, %v1285_v42 }
 0xb36   : > { %v1542_v43 = vpop.f32.mrf.mxu0 }
 0xbf5   : > { %v1359_v44 = vpop.f32.mrf.mxu1 }
 0xbf6   : > { %v1363_v45 = vadd.f32 %v1359_v44, %v1122_v38 }
 0xbf7   : > { %v1547_v46 = vpop.f32.mrf.mxu1 }
 0xbf8   : > { %1364 = vst.msk [vmem:[%s273_s27] sm:$0xff] %vm275_vm0, %v1363_v45 }
 0xbf9 PF: > { %s17_s24 = sadd.s32 1, %s1593_s24  }
 0xbfa   : > { %p14_p4 = scmp.ge.s32.totalorder %s17_s24, 4  }
 0xbfc   :  { %16 = sbr.rel (!%p14_p4) target bundleno = 1 (0x1), region = 78 }

// kernel: transformer_encoder.8
= control target key start
LH: loop header
LB: loop body
LE: loop exit
PB: predicated region body
PF: predicated region fallthrough
CT: control target
= control target key end

     0   :  { %vm28_vm0 = vcmask 261120   ;;  %s424_s0 = inlined_call_operand.vmem [shape: f32[16,32], index: 0, kind: input, shape index: {}, may-alias: {0,7}]   ;;  %s425_s3 = inlined_call_operand.vmem [shape: f32[32,32], index: 3, kind: input, shape index: {}]   ;;  %s426_s1 = inlined_call_operand.vmem [shape: f32[1,32], index: 1, kind: input, shape index: {}]   ;;  %s427_s2 = inlined_call_operand.vmem [shape: f32[1,32], index: 2, kind: input, shape index: {}]   ;;  %s428_s5 = inlined_call_operand.vmem [shape: f32[32,32], index: 5, kind: input, shape index: {}]   ;;  %s429_s4 = inlined_call_operand.vmem [shape: f32[1,32], index: 4, kind: input, shape index: {}]   ;;  %s430_s6 = inlined_call_operand.vmem [shape: f32[1,32], index: 6, kind: input, shape index: {}]   ;;  %s431_s7 = inlined_call_operand.vmem [shape: f32[16,32], index: 7, kind: output, shape index: {}, may-alias: {0,7}]  }
   0x1   :  { %v359_v0 = vld [vmem:[%s424_s0] sm:$0xff]  ;;  %v364_v1 = vld [vmem:[%s424_s0 + $0x8] sm:$0xff]  ;;  %v77_v14 = vld [vmem:[%s425_s3 + $0x18] sm:$0xff] }
   0x2   :  { %v29_v2 = vsel %vm28_vm0, %v359_v0, 0.0  ;;  %v32_v3 = vsel %vm28_vm0, %v364_v1, 0.0  ;;  %v76_v15 = vld [vmem:[%s425_s3 + $0x10] sm:$0xff]  ;;  %290 = vmatprep.subr.mxu0 %v77_v14  ;;  %v75_v16 = vld [vmem:[%s425_s3 + $0x8] sm:$0xff]  ;;  %v74_v17 = vld [vmem:[%s425_s3] sm:$0xff] }
   0x3   :  { %30 = vadd.xlane.f32.xlu0 %v29_v2  ;;  %291 = vmatpush3.msra.mxu0 %v77_v14  ;;  %v270_v25 = vld [vmem:[%s426_s1] ss:$0 sm:$0xff]  ;;  %v171_v34 = vld [vmem:[%s428_s5 + $0x18] sm:$0xff]  ;;  %v170_v35 = vld [vmem:[%s428_s5 + $0x10] sm:$0xff] }
   0x4   :  { %292 = vmatprep.subr.mxu0 %v76_v15  ;;  %v271_v27 = vld [vmem:[%s427_s2] ss:$0 sm:$0xff]  ;;  %301 = vmatprep.subr.mxu1 %v171_v34  ;;  %v169_v36 = vld [vmem:[%s428_s5 + $0x8] sm:$0xff] }
   0x5   :  { %293 = vmatpush3.msra.mxu0 %v76_v15  ;;  %302 = vmatpush3.msra.mxu1 %v171_v34  ;;  %v168_v37 = vld [vmem:[%s428_s5] sm:$0xff] }
   0x6   :  { %294 = vmatprep.subr.mxu0 %v75_v16  ;;  %303 = vmatprep.subr.mxu1 %v170_v35  ;;  %v272_v38 = vld [vmem:[%s429_s4] ss:$0 sm:$0xff] }
   0x7   :  { %33 = vadd.xlane.f32.xlu0 %v32_v3  ;;  %295 = vmatpush3.msra.mxu0 %v75_v16  ;;  %v277_v46 = vld [vmem:[%s430_s6] ss:$0 sm:$0xff] }
   0x8   :  { %296 = vmatprep.subr.mxu0 %v74_v17  ;;  %304 = vmatpush3.msra.mxu1 %v170_v35 }
   0x9   :  { %297 = vmatpush3.msra.mxu0 %v74_v17  ;;  %305 = vmatprep.subr.mxu1 %v169_v36 }
   0xa   :  { %306 = vmatpush3.msra.mxu1 %v169_v36 }
   0xb   :  { %307 = vmatprep.subr.mxu1 %v168_v37 }
   0xc   :  { %308 = vmatpush3.msra.mxu1 %v168_v37 }
  0x8c   :  { %v31_v4 = vpop.xlane.xlu0 %30 }
  0x8d   :  { %v36_v5 = vmul.f32 0.03125, %v31_v4 }
  0x8f   :  { %v38_v6 = vsub.f32 %v359_v0, %v36_v5 }
  0x90   :  { %v34_v7 = vpop.xlane.xlu0 %33 }
  0x91   :  { %v37_v8 = vmul.f32 0.03125, %v34_v7  ;;  %v40_v9 = vmul.f32 %v38_v6, %v38_v6 }
  0x93   :  { %v39_v10 = vsub.f32 %v364_v1, %v37_v8  ;;  %v42_v11 = vsel %vm28_vm0, %v40_v9, 0.0 }
  0x94   :  { %43 = vadd.xlane.f32.xlu1 %v42_v11 }
  0x95   :  { %v41_v12 = vmul.f32 %v39_v10, %v39_v10 }
  0x97   :  { %v45_v13 = vsel %vm28_vm0, %v41_v12, 0.0 }
  0x98   :  { %46 = vadd.xlane.f32.xlu1 %v45_v13 }
 0x11d   :  { %v44_v18 = vpop.xlane.xlu1 %43 }
 0x11e   :  { %v48_v19 = vmul.f32 0.03125, %v44_v18 }
 0x120   :  { %v50_v20 = vadd.f32 1e-05, %v48_v19 }
 0x121   :  { %v47_v21 = vpop.xlane.xlu1 %46 }
 0x122   :  { %312 = vrsqrt.f32 %v50_v20  ;;  %v49_v22 = vmul.f32 0.03125, %v47_v21 }
 0x124   :  { %v51_v23 = vadd.f32 1e-05, %v49_v22 }
 0x126   :  { %314 = vrsqrt.f32 %v51_v23 }
 0x12f   :  { %v313_v24 = vpop.eup %312 }
 0x130   :  { %v54_v26 = vmul.f32 %v313_v24, %v38_v6 }
 0x132   :  { %v63_v28 = vmul.f32 %v270_v25, %v54_v26 }
 0x133   :  { %v315_v29 = vpop.eup %314 }
 0x134   :  { %v55_v30 = vmul.f32 %v315_v29, %v39_v10  ;;  %v72_v31 = vadd.f32 %v271_v27, %v63_v28 }
 0x136   :  { %v64_v32 = vmul.f32 %v270_v25, %v55_v30  ;;  %298 = vmatprep.mubr.msk.f32.mxu0 %vm28_vm0, %v72_v31 }
 0x138   :  { %v73_v33 = vadd.f32 %v271_v27, %v64_v32 }
 0x13a   :  { %299 = vmatmul.mubr.msk.f32.vlgmr.msra.gmra.mxu0 %vm28_vm0, %v73_v33 }
 0x1fa   :  { %v300_v39 = vpop.f32.mrf.mxu0 }
 0x1fb   :  { %v163_v40 = vadd.f32 %v300_v39, %v272_v38 }
 0x1fc   :  { %v157_v41 = vpop.f32.mrf.mxu0 }
 0x1fd   :  { %v158_v42 = vadd.f32 %v272_v38, %v157_v41  ;;  %v167_v44 = vmax.f32 %v163_v40, 0.0 }
 0x1ff   :  { %v166_v43 = vmax.f32 %v158_v42, 0.0 }
 0x201   :  { %309 = vmatprep.mubr.msk.f32.mxu1 %vm28_vm0, %v166_v43 }
 0x202   :  { %310 = vmatmul.mubr.msk.f32.vlgmr.msra.gmra.mxu1 %vm28_vm0, %v167_v44 }
 0x2c2   :  { %v311_v45 = vpop.f32.mrf.mxu1 }
 0x2c3   :  { %v254_v47 = vadd.f32 %v311_v45, %v364_v1 }
 0x2c4   :  { %v244_v48 = vpop.f32.mrf.mxu1 }
 0x2c5   :  { %v263_v49 = vadd.f32 %v277_v46, %v254_v47  ;;  %v253_v50 = vadd.f32 %v244_v48, %v359_v0 }
 0x2c7   :  { %265 = vst.msk [vmem:[%s431_s7 + $0x8] sm:$0xff] %vm28_vm0, %v263_v49  ;;  %v262_v51 = vadd.f32 %v277_v46, %v253_v50 }
 0x2c9   :  { %264 = vst.msk [vmem:[%s431_s7] sm:$0xff] %vm28_vm0, %v262_v51 }

</bundles_post_ra>
